<compile_context>
chip_gen: v5e
topology: v5e:2x2
jax: 0.10.0
libtpu: 0.0.40
codegen_flags: <defaults>
</compile_context>

<pallas_src>
import functools

import jax
import jax.numpy as jnp
from jax.experimental import pallas as pl
from jax.experimental.pallas import tpu as pltpu

LANE = 128          # TPU lane width
SUBLANE = 8         # f32 sublane count — batch tile granularity


def _round_up(n, m):
    return ((n + m - 1) // m) * m


def _nolstm_fused_kernel(x_ref, w_ref, b_ref, o_ref):
    # Single fused affine: y = x @ W + b. MXU matmul with f32 accumulate,
    # VPU bias add, single store of the full tile.
    y = jnp.dot(x_ref[...], w_ref[...], preferred_element_type=jnp.float32)
    o_ref[...] = (y + b_ref[...]).astype(o_ref.dtype)


def prepare_nolstm_params(w1, b1, w2, b2):
    """Collapse the two affine layers ONCE per parameter set (hoisted out of
    the per-call forward path):

        (x @ W1 + b1) @ W2 + b2  ==  x @ (W1 @ W2) + (b1 @ W2 + b2)

    Returns both the logical-width collapsed params ("w", "b") and the
    128-lane zero-padded variants ("w_pad", "b_pad") for small-batch calls.
    """
    w = jnp.dot(w1, w2, preferred_element_type=jnp.float32)        # (D_in, O)
    b = jnp.dot(b1, w2, preferred_element_type=jnp.float32) + b2   # (1, O)
    out = w.shape[1]
    out_pad = max(LANE, _round_up(out, LANE))
    w_pad = jnp.pad(w, ((0, 0), (0, out_pad - out)))
    b_pad = jnp.pad(b, ((0, 0), (0, out_pad - out)))
    return {"w": w, "b": b, "w_pad": w_pad, "b_pad": b_pad}


@functools.partial(jax.jit, static_argnames=("out_features", "block_b"))
def nolstm_forward(x, w, b, *, out_features, block_b=512):
    """Forward pass of noLSTM on pre-collapsed parameters.

    x : (B, D_in) f32
    w : (D_in, N) f32 collapsed weight (N == out_features, or 128-lane-padded)
    b : (1, N)   f32 collapsed bias
    Returns (B, out_features) f32.
    """
    B, d_in = x.shape
    n = w.shape[1]

    # Batch tile: multiple of 8 sublanes, capped at block_b (rounded up to 8).
    tb = min(_round_up(B, SUBLANE), _round_up(block_b, SUBLANE))
    # v7x megacore: keep >=2 grid steps when the batch allows so the
    # "parallel" batch axis actually shards across both TensorCores.
    if B > SUBLANE and pl.cdiv(B, tb) < 2:
        tb = _round_up(pl.cdiv(B, 2), SUBLANE)
    grid = (pl.cdiv(B, tb),)   # ragged last block handled by OOB masking

    # Advisory cost with the LOGICAL output width (not the padded 128).
    cost = pl.CostEstimate(
        flops=2 * B * d_in * out_features,
        transcendentals=0,
        bytes_accessed=4 * (B * d_in + d_in * n + n + B * out_features),
    )

    y = pl.pallas_call(
        _nolstm_fused_kernel,
        out_shape=jax.ShapeDtypeStruct((B, n), jnp.float32),
        grid_spec=pltpu.PrefetchScalarGridSpec(
            num_scalar_prefetch=0,
            grid=grid,
            in_specs=[
                # x: tiled over batch, auto double-buffered; no pad copy —
                # the ragged last tile's OOB rows are read-garbage/write-masked.
                pl.BlockSpec((tb, d_in), lambda i: (i, 0)),
                # collapsed weight / bias: VMEM-resident across the grid.
                pl.BlockSpec((d_in, n), lambda i: (0, 0)),
                pl.BlockSpec((1, n), lambda i: (0, 0)),
            ],
            out_specs=pl.BlockSpec((tb, n), lambda i: (i, 0)),
        ),
        compiler_params=pltpu.CompilerParams(
            dimension_semantics=("parallel",),
        ),
        cost_estimate=cost,
    )(x, w, b)

    # Strip lane padding (only when the padded variant was used; the slice of
    # a small (B, 128) result is cheap and absent on the large-B narrow path).
    return y if n == out_features else y[:, :out_features]


if __name__ == "__main__":
    # Small shapes consistent with the module's forward:
    #   input_size (max_length) = 16, hidden_layer_size = 32, output_size = 2
    B, D_IN, HID, OUT = 8, 16, 32, 2

    key = jax.random.PRNGKey(0)
    kx, kw1, kb1, kw2, kb2 = jax.random.split(key, 5)

    x = jax.random.normal(kx, (B, D_IN), dtype=jnp.float32)

    # Deterministic parameter init (PyTorch nn.Linear-style uniform bounds).
    bound1 = 1.0 / (D_IN ** 0.5)
    w1 = jax.random.uniform(kw1, (D_IN, HID), jnp.float32, -bound1, bound1)
    b1 = jax.random.uniform(kb1, (1, HID), jnp.float32, -bound1, bound1)
    bound2 = 1.0 / (HID ** 0.5)
    w2 = jax.random.uniform(kw2, (HID, OUT), jnp.float32, -bound2, bound2)
    b2 = jax.random.uniform(kb2, (1, OUT), jnp.float32, -bound2, bound2)

    # --- One-time parameter preparation (hoisted out of the forward path). ---
    params = prepare_nolstm_params(w1, b1, w2, b2)
    params = jax.tree_util.tree_map(jax.block_until_ready, params)

    # Small batch -> lane-dense 128-wide padded output (no masked-store
    # epilogue). A throughput-sized batch would pass params["w"]/params["b"]
    # instead and store the logical 2-wide output (64x fewer HBM write bytes).
    lane_dense = B < 1024
    w = params["w_pad"] if lane_dense else params["w"]
    b = params["b_pad"] if lane_dense else params["b"]

    out = nolstm_forward(x, w, b, out_features=OUT)
    out = jax.block_until_ready(out)

    # Pure-JAX reference of the original two-layer math.
    ref = (x @ w1 + b1) @ w2 + b2
    assert out.shape == (B, OUT)
    assert jnp.allclose(out, ref, atol=1e-4, rtol=1e-4)

    print("KERNEL_OK")
</pallas_src>

<mosaic_0001>
module attributes {stable_mosaic.version = 11 : i64} {
  func.func @_nolstm_fused_kernel(%arg0: i32, %arg1: memref<8x16xf32, #tpu.memory_space<vmem>>, %arg2: memref<16x128xf32, #tpu.memory_space<vmem>>, %arg3: memref<1x128xf32, #tpu.memory_space<vmem>>, %arg4: memref<8x128xf32, #tpu.memory_space<vmem>>) attributes {dimension_semantics = [#tpu.dimension_semantics<parallel>], iteration_bounds = array<i64: 1>, scalar_prefetch = 0 : i64, scratch_operands = 0 : i64, tpu.core_type = #tpu.core_type<tc>, window_params = [{transform_indices = @transform_0, window_bounds = array<i64: 8, 16>}, {pipeline_mode = #tpu.pipeline_mode<synchronous>, transform_indices = @transform_1, window_bounds = array<i64: 16, 128>}, {pipeline_mode = #tpu.pipeline_mode<synchronous>, transform_indices = @transform_2, window_bounds = array<i64: 1, 128>}, {transform_indices = @transform_3, window_bounds = array<i64: 8, 128>}]} {
    %c0 = arith.constant 0 : index
    %c0_0 = arith.constant 0 : index
    %0 = vector.load %arg1[%c0, %c0_0] : memref<8x16xf32, #tpu.memory_space<vmem>>, vector<8x16xf32>
    %c0_1 = arith.constant 0 : index
    %c0_2 = arith.constant 0 : index
    %1 = vector.load %arg2[%c0_1, %c0_2] : memref<16x128xf32, #tpu.memory_space<vmem>>, vector<16x128xf32>
    %cst = arith.constant dense<0.000000e+00> : vector<8x128xf32>
    %2 = tpu.matmul %0, %1, %cst {dimension_numbers = #tpu.dot_dimension_numbers<[1], [0], [0], [1], [0, 0, 1, 1], [], []>} : vector<8x16xf32>, vector<16x128xf32>, vector<8x128xf32> -> vector<8x128xf32>
    %c0_3 = arith.constant 0 : index
    %c0_4 = arith.constant 0 : index
    %3 = vector.load %arg3[%c0_3, %c0_4] : memref<1x128xf32, #tpu.memory_space<vmem>>, vector<1x128xf32>
    %4 = vector.broadcast %3 : vector<1x128xf32> to vector<8x128xf32>
    %5 = arith.addf %2, %4 : vector<8x128xf32>
    %c0_5 = arith.constant 0 : index
    %c0_6 = arith.constant 0 : index
    %6 = vector.load %arg4[%c0_5, %c0_6] : memref<8x128xf32, #tpu.memory_space<vmem>>, vector<8x128xf32>
    tpu.vector_store %arg4[%c0_5, %c0_6], %5 {strides = array<i32>} : memref<8x128xf32, #tpu.memory_space<vmem>>, vector<8x128xf32>,
    return
  }
  func.func @transform_0(%arg0: i32) -> (i32, i32) {
    %c0_i32 = arith.constant 0 : i32
    %c0_i32_0 = arith.constant 0 : i32
    return %arg0, %c0_i32 : i32, i32
  }
  func.func @transform_1(%arg0: i32) -> (i32, i32) {
    %c0_i32 = arith.constant 0 : i32
    %c0_i32_0 = arith.constant 0 : i32
    %c0_i32_1 = arith.constant 0 : i32
    return %c0_i32, %c0_i32_0 : i32, i32
  }
  func.func @transform_2(%arg0: i32) -> (i32, i32) {
    %c0_i32 = arith.constant 0 : i32
    %c0_i32_0 = arith.constant 0 : i32
    %c0_i32_1 = arith.constant 0 : i32
    return %c0_i32, %c0_i32_0 : i32, i32
  }
  func.func @transform_3(%arg0: i32) -> (i32, i32) {
    %c0_i32 = arith.constant 0 : i32
    %c0_i32_0 = arith.constant 0 : i32
    return %arg0, %c0_i32 : i32, i32
  }
}

</mosaic_0001>

<bundles_post_ra>
// kernel: nolstm_forward.1
= control target key start
LH: loop header
LB: loop body
LE: loop exit
PB: predicated region body
PF: predicated region fallthrough
CT: control target
= control target key end

     0   :  { %8 = vsyncpa [#allocation3], 0  ;;  %s176_s0 = inlined_call_operand.hbm [shape: f32[8,16], index: 0, kind: input, shape index: {}]   ;;  %s177_s1 = inlined_call_operand.hbm [shape: f32[16,128], index: 1, kind: input, shape index: {}]   ;;  %s178_s2 = inlined_call_operand.vmem [shape: f32[1,128], index: 2, kind: input, shape index: {}]   ;;  %s179_s3 = inlined_call_operand.vmem [shape: f32[8,128], index: 3, kind: output, shape index: {}]  }
   0x1   :  { %s15_s14 = sshll.u32 %s176_s0, 4  ;;  %s16_s14 = int_to_ptr.hbm [resolvable:$true] %s15_s14 }
   0x2   :  { %9 = vsyncpa [#allocation5], 0  ;;  %s140_s15 = smov [#allocation2]   ;;  %s25_s19 = sshll.u32 %s177_s1, 4  ;;  %s26_s19 = int_to_ptr.hbm [resolvable:$true] %s25_s19 }
   0x3   :  { %s17_s16 = sshll.u32 %s140_s15, 4  ;;  %s141_s20 = smov [#allocation4]   ;;  %s18_s16 = int_to_ptr.vmem [resolvable:$true] %s17_s16 }
   0x4   :  { %20 = dma.hbm_to_vmem [thread:$0]  %s16_s14, 128, %s18_s16, [#allocation3]  }
   0x5   :  { %s27_s21 = sshll.u32 %s141_s20, 4  ;;  %s142_s22 = smov 128   ;;  %s28_s21 = int_to_ptr.vmem [resolvable:$true] %s27_s21 }
   0x6   :  { %s143_s23 = smov 8  }
   0x7   :  { %33 = dma.hbm_to_vmem [thread:$0]  %s26_s19, 256, %s28_s21, [#allocation5], %s142_s22, %s142_s22, %s143_s23  }
   0x8   :  { %136 = dma.done.wait [#allocation3], 128  }
   0x9   :  { %137 = vsyncadd [#allocation3], 4294967168 }
   0xa   :  { %138 = dma.done.wait [#allocation5], 256  }
   0xb   :  { %139 = vsyncadd [#allocation5], 4294967040  ;;  %v46_v0 = vld [vmem:[#allocation4 + $0x8] sm:$0xff]  ;;  %v45_v1 = vld [vmem:[#allocation4] sm:$0xff]  ;;  %vm51_vm0 = vcmask 130048  }
   0xc   :  { %69 = vmatpush.msra.mxu0 %v46_v0  ;;  %v44_v2 = vld [vmem:[#allocation2] sm:$0xff] }
   0xd   :  { %v87_v3 = vld [vmem:[%s178_s2] ss:$0 sm:$0xff] }
   0xe   :  { %70 = vmatpush.msra.mxu0 %v45_v1 }
   0xf   :  { %82 = vmatmul.msk.f32.vlgmr.msra.gmra.mxu0 %vm51_vm0, %v44_v2 }
  0x8c   :  { %v72_v4 = vpop.f32.mrf.mxu0 }
  0x8d   :  { %v73_v5 = vadd.f32 %v87_v3, %v72_v4 }
  0x8f   :  { %75 = vst [vmem:[%s179_s3] sm:$0xff] %v73_v5 }
  0x90   :  { %80 = vsyncpa [#allocation3], 1 }
  0x91   :  { %81 = vsyncpa [#allocation5], 1 }

</bundles_post_ra>
